<compile_context>
chip_gen: v7x
topology: tpu7x:2x2x1
jax: 0.10.0
libtpu: 0.0.40
codegen_flags: <defaults>
</compile_context>

<pallas_src>
import jax
import jax.numpy as jnp
from jax import lax
from jax.experimental import pallas as pl
from jax.experimental.pallas import tpu as pltpu

LANES = 128


def _make_lovasz_kernel(tb, c):
    def kernel(tri_ref, su_ref, idx_ref, err_ref, gt_ref, o_ref):
        err = err_ref[...]                       # (TB, C, 128) f32, sorted desc (+ zero pads)
        gt_bf = gt_ref[...]                      # (TB, C, 128) bf16, labels in sorted order
        gt = gt_bf.astype(jnp.float32)
        idx1 = idx_ref[...]                      # (C, 128) f32, global 1-based pixel index

        # Within-chunk inclusive cumsum on the MXU: (TB*C, 128) @ tri128 (bf16, exact).
        cum_in = jnp.dot(
            gt_bf.reshape(tb * c, LANES), tri_ref[...],
            preferred_element_type=jnp.float32,
        ).reshape(tb, c, LANES)

        totals = jnp.sum(gt, axis=2)             # (TB, C) positives per chunk
        if c > 1:
            # Exclusive cumsum of chunk totals via a tiny strict-upper matmul.
            offs = jnp.dot(totals, su_ref[...],
                           preferred_element_type=jnp.float32)   # (TB, C)
            cum_gt = cum_in + offs[:, :, None]
        else:
            cum_gt = cum_in

        gts = jnp.sum(totals, axis=1, keepdims=True)[:, :, None]  # (TB, 1, 1)

        inter = gts - cum_gt
        union = gts + idx1[None] - cum_gt        # cumsum(1 - gt) == idx1 - cum_gt
        jac = 1.0 - inter / union

        # jaccard at the previous pixel, rebuilt analytically (no cross-lane shift):
        #   cum[i-1] = cum[i] - gt[i], index shifts by one.
        inter_p = inter + gt
        # union_p == 0 only at global pixel 0 of an all-negative image; that lane
        # is overridden by the jnp.where below, the clamp just keeps the divide safe.
        union_p = jnp.maximum(union - 1.0 + gt, 1.0)
        jac_p = 1.0 - inter_p / union_p
        grad = jnp.where(idx1[None] == 1.0, jac, jac - jac_p)

        # Lane pads have err == 0 and gt == 0, so they contribute exactly 0 here.
        weighted = jnp.maximum(err, 0.0) * grad                  # (TB, C, 128)
        o_ref[...] = jnp.sum(jnp.sum(weighted, axis=2), axis=1, keepdims=True)

    return kernel


def lovasz_hinge_loss(logits, labels, per_image=True, ignore=None):
    """LovaszHingeLoss.forward: mean per-image binary Lovasz hinge loss."""
    # TODO(synk): `ignore` removes a data-dependent (ragged) subset of pixels per
    # image; no clean static-shape Pallas equivalent, so it is not supported.
    assert ignore is None, "ignore labels not supported"

    if per_image:
        b = logits.shape[0]
        logits2d = logits.reshape(b, -1).astype(jnp.float32)
        labels2d = labels.reshape(b, -1).astype(jnp.float32)
    else:
        logits2d = logits.reshape(1, -1).astype(jnp.float32)
        labels2d = labels.reshape(1, -1).astype(jnp.float32)
    b, p = logits2d.shape

    # Hinge errors + fused descending key/value sort (single lax.sort, no
    # argsort + gathers). Sorting has no Pallas TPU equivalent, so it stays in
    # the wrapper; everything downstream runs in the kernel.
    signs = 2.0 * labels2d - 1.0
    errors = 1.0 - logits2d * signs
    neg_sorted, gt_sorted = lax.sort((-errors, labels2d), dimension=1, num_keys=1)
    errors_sorted = -neg_sorted

    # Pad the pixel dim to a multiple of 128 (err=0 / gt=0 pads contribute 0).
    p_pad = ((p + LANES - 1) // LANES) * LANES
    c = p_pad // LANES
    if p_pad != p:
        lane_pad = ((0, 0), (0, p_pad - p))
        errors_sorted = jnp.pad(errors_sorted, lane_pad)
        gt_sorted = jnp.pad(gt_sorted, lane_pad)

    # Batch TB images per grid step; pad batch with all-zero images (loss 0).
    tb = min(8, b)
    b_pad = ((b + tb - 1) // tb) * tb
    if b_pad != b:
        batch_pad = ((0, b_pad - b), (0, 0))
        errors_sorted = jnp.pad(errors_sorted, batch_pad)
        gt_sorted = jnp.pad(gt_sorted, batch_pad)
    nblk = b_pad // tb

    err3 = errors_sorted.reshape(b_pad, c, LANES)
    gt3 = gt_sorted.reshape(b_pad, c, LANES).astype(jnp.bfloat16)

    # Grid-invariant constants (constant index_map -> DMA'd once, kept resident).
    tri = (jnp.arange(LANES)[:, None] <= jnp.arange(LANES)[None, :]
           ).astype(jnp.bfloat16)                                  # (128, 128)
    s_upper = (jnp.arange(c)[:, None] < jnp.arange(c)[None, :]
               ).astype(jnp.float32)                               # (C, C)
    idx1 = (jnp.arange(p_pad, dtype=jnp.float32) + 1.0).reshape(c, LANES)

    losses = pl.pallas_call(
        _make_lovasz_kernel(tb, c),
        out_shape=jax.ShapeDtypeStruct((b_pad, 1), jnp.float32),
        grid_spec=pltpu.PrefetchScalarGridSpec(
            num_scalar_prefetch=0,
            grid=(nblk,),
            in_specs=[
                pl.BlockSpec((LANES, LANES), lambda i: (0, 0)),     # tri128 (resident)
                pl.BlockSpec((c, c), lambda i: (0, 0)),             # strict-upper (resident)
                pl.BlockSpec((c, LANES), lambda i: (0, 0)),         # pixel index (resident)
                pl.BlockSpec((tb, c, LANES), lambda i: (i, 0, 0)),  # errors_sorted
                pl.BlockSpec((tb, c, LANES), lambda i: (i, 0, 0)),  # gt_sorted
            ],
            out_specs=pl.BlockSpec((tb, 1), lambda i: (i, 0)),
        ),
        compiler_params=pltpu.CompilerParams(
            dimension_semantics=("parallel",),
            vmem_limit_bytes=32 * 1024 * 1024,
        ),
    )(tri, s_upper, idx1, err3, gt3)

    # Padded batch images contribute exactly 0; divide by the real image count.
    return jnp.sum(losses) / b


def lovasz_hinge_ref(logits, labels, per_image=True):
    """Pure-JAX mirror of the PyTorch LovaszHingeLoss (ignore=None)."""
    def flat_loss(log_f, lab_f):
        signs = 2.0 * lab_f - 1.0
        errors = 1.0 - log_f * signs
        perm = jnp.argsort(-errors)
        errors_sorted = errors[perm]
        gt_sorted = lab_f[perm]
        gts = jnp.sum(gt_sorted)
        inter = gts - jnp.cumsum(gt_sorted)
        union = gts + jnp.cumsum(1.0 - gt_sorted)
        jac = 1.0 - inter / union
        grad = jnp.concatenate([jac[:1], jac[1:] - jac[:-1]])
        return jnp.dot(jnp.maximum(errors_sorted, 0.0), grad)

    if per_image:
        losses = [flat_loss(l.reshape(-1), t.reshape(-1))
                  for l, t in zip(logits, labels)]
        return sum(losses) / len(losses)
    return flat_loss(logits.reshape(-1), labels.reshape(-1))


if __name__ == "__main__":
    key = jax.random.PRNGKey(0)
    k1, k2 = jax.random.split(key)

    # Module spec: logits [B, H, W] (unbounded), binary masks [B, H, W].
    B, H, W = 2, 16, 16
    logits = jax.random.normal(k1, (B, H, W), dtype=jnp.float32) * 2.0
    targets = (jax.random.uniform(k2, (B, H, W)) > 0.5).astype(jnp.float32)

    out = lovasz_hinge_loss(logits, targets, per_image=True, ignore=None)
    out = jax.block_until_ready(out)

    ref = lovasz_hinge_ref(logits, targets, per_image=True)
    assert jnp.allclose(out, ref, rtol=1e-4, atol=1e-5), (out, ref)

    print("KERNEL_OK")
</pallas_src>

<mosaic_0001>
module attributes {stable_mosaic.version = 11 : i64} {
  func.func @kernel(%arg0: i32, %arg1: memref<128x128xbf16, #tpu.memory_space<vmem>>, %arg2: memref<2x2xf32, #tpu.memory_space<vmem>>, %arg3: memref<2x128xf32, #tpu.memory_space<vmem>>, %arg4: memref<2x2x128xf32, #tpu.memory_space<vmem>>, %arg5: memref<2x2x128xbf16, #tpu.memory_space<vmem>>, %arg6: memref<2x1xf32, #tpu.memory_space<vmem>>) attributes {dimension_semantics = [#tpu.dimension_semantics<parallel>], iteration_bounds = array<i64: 1>, scalar_prefetch = 0 : i64, scratch_operands = 0 : i64, tpu.core_type = #tpu.core_type<tc>, window_params = [{pipeline_mode = #tpu.pipeline_mode<synchronous>, transform_indices = @transform_0, window_bounds = array<i64: 128, 128>}, {pipeline_mode = #tpu.pipeline_mode<synchronous>, transform_indices = @transform_1, window_bounds = array<i64: 2, 2>}, {pipeline_mode = #tpu.pipeline_mode<synchronous>, transform_indices = @transform_2, window_bounds = array<i64: 2, 128>}, {transform_indices = @transform_3, window_bounds = array<i64: 2, 2, 128>}, {transform_indices = @transform_4, window_bounds = array<i64: 2, 2, 128>}, {transform_indices = @transform_5, window_bounds = array<i64: 2, 1>}]} {
    %c0 = arith.constant 0 : index
    %c0_0 = arith.constant 0 : index
    %c0_1 = arith.constant 0 : index
    %0 = vector.load %arg4[%c0, %c0_0, %c0_1] : memref<2x2x128xf32, #tpu.memory_space<vmem>>, vector<2x2x128xf32>
    %c0_2 = arith.constant 0 : index
    %c0_3 = arith.constant 0 : index
    %c0_4 = arith.constant 0 : index
    %1 = vector.load %arg5[%c0_2, %c0_3, %c0_4] : memref<2x2x128xbf16, #tpu.memory_space<vmem>>, vector<2x2x128xbf16>
    %2 = arith.extf %1 : vector<2x2x128xbf16> to vector<2x2x128xf32>
    %c0_5 = arith.constant 0 : index
    %c0_6 = arith.constant 0 : index
    %3 = vector.load %arg3[%c0_5, %c0_6] : memref<2x128xf32, #tpu.memory_space<vmem>>, vector<2x128xf32>
    %4 = vector.shape_cast %1 : vector<2x2x128xbf16> to vector<4x128xbf16>
    %c0_7 = arith.constant 0 : index
    %c0_8 = arith.constant 0 : index
    %5 = vector.load %arg1[%c0_7, %c0_8] : memref<128x128xbf16, #tpu.memory_space<vmem>>, vector<128x128xbf16>
    %cst = arith.constant dense<0.000000e+00> : vector<4x128xf32>
    %6 = tpu.matmul %4, %5, %cst {dimension_numbers = #tpu.dot_dimension_numbers<[1], [0], [0], [1], [0, 0, 1, 1], [], []>} : vector<4x128xbf16>, vector<128x128xbf16>, vector<4x128xf32> -> vector<4x128xf32>
    %7 = vector.shape_cast %6 : vector<4x128xf32> to vector<2x2x128xf32>
    %cst_9 = arith.constant dense<0.000000e+00> : vector<2x2xf32>
    %8 = vector.multi_reduction <add>, %2, %cst_9 [2] : vector<2x2x128xf32> to vector<2x2xf32>
    %c0_10 = arith.constant 0 : index
    %c0_11 = arith.constant 0 : index
    %9 = vector.load %arg2[%c0_10, %c0_11] : memref<2x2xf32, #tpu.memory_space<vmem>>, vector<2x2xf32>
    %cst_12 = arith.constant dense<0.000000e+00> : vector<2x2xf32>
    %10 = tpu.matmul %8, %9, %cst_12 {dimension_numbers = #tpu.dot_dimension_numbers<[1], [0], [0], [1], [0, 0, 1, 1], [], []>} : vector<2x2xf32>, vector<2x2xf32>, vector<2x2xf32> -> vector<2x2xf32>
    %11 = vector.shape_cast %10 : vector<2x2xf32> to vector<2x2x1xf32>
    %12 = vector.broadcast %11 : vector<2x2x1xf32> to vector<2x2x128xf32>
    %13 = arith.addf %7, %12 : vector<2x2x128xf32>
    %cst_13 = arith.constant dense<0.000000e+00> : vector<2xf32>
    %14 = vector.multi_reduction <add>, %8, %cst_13 [1] : vector<2x2xf32> to vector<2xf32>
    %15 = vector.shape_cast %14 : vector<2xf32> to vector<2x1xf32>
    %16 = vector.shape_cast %15 : vector<2x1xf32> to vector<2x1x1xf32>
    %17 = vector.broadcast %16 : vector<2x1x1xf32> to vector<2x2x128xf32>
    %18 = arith.subf %17, %13 : vector<2x2x128xf32>
    %19 = vector.shape_cast %3 : vector<2x128xf32> to vector<1x2x128xf32>
    %20 = vector.broadcast %16 : vector<2x1x1xf32> to vector<2x2x128xf32>
    %21 = vector.broadcast %19 : vector<1x2x128xf32> to vector<2x2x128xf32>
    %22 = arith.addf %20, %21 : vector<2x2x128xf32>
    %23 = arith.subf %22, %13 : vector<2x2x128xf32>
    %24 = arith.divf %18, %23 : vector<2x2x128xf32>
    %cst_14 = arith.constant 1.000000e+00 : f32
    %25 = vector.broadcast %cst_14 : f32 to vector<2x2x128xf32>
    %26 = arith.subf %25, %24 : vector<2x2x128xf32>
    %27 = arith.addf %18, %2 : vector<2x2x128xf32>
    %cst_15 = arith.constant 1.000000e+00 : f32
    %28 = vector.broadcast %cst_15 : f32 to vector<2x2x128xf32>
    %29 = arith.subf %23, %28 : vector<2x2x128xf32>
    %30 = arith.addf %29, %2 : vector<2x2x128xf32>
    %cst_16 = arith.constant 1.000000e+00 : f32
    %31 = vector.broadcast %cst_16 : f32 to vector<2x2x128xf32>
    %32 = arith.maximumf %30, %31 : vector<2x2x128xf32>
    %33 = arith.divf %27, %32 : vector<2x2x128xf32>
    %cst_17 = arith.constant 1.000000e+00 : f32
    %34 = vector.broadcast %cst_17 : f32 to vector<2x2x128xf32>
    %35 = arith.subf %34, %33 : vector<2x2x128xf32>
    %36 = vector.shape_cast %3 : vector<2x128xf32> to vector<1x2x128xf32>
    %cst_18 = arith.constant 1.000000e+00 : f32
    %37 = vector.broadcast %cst_18 : f32 to vector<1x2x128xf32>
    %38 = arith.cmpf oeq, %36, %37 : vector<1x2x128xf32>
    %39 = arith.subf %26, %35 : vector<2x2x128xf32>
    %40 = vector.shape_cast %38 : vector<1x2x128xi1> to vector<1x2x128xi1>
    %41 = vector.broadcast %40 : vector<1x2x128xi1> to vector<2x2x128xi1>
    %42 = arith.select %41, %26, %39 : vector<2x2x128xi1>, vector<2x2x128xf32>
    %cst_19 = arith.constant 0.000000e+00 : f32
    %43 = vector.broadcast %cst_19 : f32 to vector<2x2x128xf32>
    %44 = arith.maximumf %0, %43 : vector<2x2x128xf32>
    %45 = arith.mulf %44, %42 : vector<2x2x128xf32>
    %cst_20 = arith.constant dense<0.000000e+00> : vector<2x2xf32>
    %46 = vector.multi_reduction <add>, %45, %cst_20 [2] : vector<2x2x128xf32> to vector<2x2xf32>
    %cst_21 = arith.constant dense<0.000000e+00> : vector<2xf32>
    %47 = vector.multi_reduction <add>, %46, %cst_21 [1] : vector<2x2xf32> to vector<2xf32>
    %48 = vector.shape_cast %47 : vector<2xf32> to vector<2x1xf32>
    %c0_22 = arith.constant 0 : index
    %c0_23 = arith.constant 0 : index
    %49 = vector.load %arg6[%c0_22, %c0_23] : memref<2x1xf32, #tpu.memory_space<vmem>>, vector<2x1xf32>
    tpu.vector_store %arg6[%c0_22, %c0_23], %48 {strides = array<i32>} : memref<2x1xf32, #tpu.memory_space<vmem>>, vector<2x1xf32>,
    return
  }
  func.func @transform_0(%arg0: i32) -> (i32, i32) {
    %c0_i32 = arith.constant 0 : i32
    %c0_i32_0 = arith.constant 0 : i32
    %c0_i32_1 = arith.constant 0 : i32
    return %c0_i32, %c0_i32_0 : i32, i32
  }
  func.func @transform_1(%arg0: i32) -> (i32, i32) {
    %c0_i32 = arith.constant 0 : i32
    %c0_i32_0 = arith.constant 0 : i32
    %c0_i32_1 = arith.constant 0 : i32
    return %c0_i32, %c0_i32_0 : i32, i32
  }
  func.func @transform_2(%arg0: i32) -> (i32, i32) {
    %c0_i32 = arith.constant 0 : i32
    %c0_i32_0 = arith.constant 0 : i32
    %c0_i32_1 = arith.constant 0 : i32
    return %c0_i32, %c0_i32_0 : i32, i32
  }
  func.func @transform_3(%arg0: i32) -> (i32, i32, i32) {
    %c0_i32 = arith.constant 0 : i32
    %c0_i32_0 = arith.constant 0 : i32
    %c0_i32_1 = arith.constant 0 : i32
    return %arg0, %c0_i32, %c0_i32_0 : i32, i32, i32
  }
  func.func @transform_4(%arg0: i32) -> (i32, i32, i32) {
    %c0_i32 = arith.constant 0 : i32
    %c0_i32_0 = arith.constant 0 : i32
    %c0_i32_1 = arith.constant 0 : i32
    return %arg0, %c0_i32, %c0_i32_0 : i32, i32, i32
  }
  func.func @transform_5(%arg0: i32) -> (i32, i32) {
    %c0_i32 = arith.constant 0 : i32
    %c0_i32_0 = arith.constant 0 : i32
    return %arg0, %c0_i32 : i32, i32
  }
}

</mosaic_0001>

<bundles_post_ra>
// kernel: tpu_custom_call.1
= control target key start
LH: loop header
LB: loop body
LE: loop exit
PB: predicated region body
PF: predicated region fallthrough
CT: control target
= control target key end

     0   :  { %10 = vsyncpa [#allocation3], 0  ;;  %s608_s0 = inlined_call_operand.hbm [shape: bf16[128,128], index: 0, kind: input, shape index: {}]   ;;  %s609_s1 = inlined_call_operand.vmem [shape: f32[2,2], index: 1, kind: input, shape index: {}]   ;;  %s610_s2 = inlined_call_operand.hbm [shape: f32[2,128], index: 2, kind: input, shape index: {}]   ;;  %s611_s3 = inlined_call_operand.vmem [shape: f32[2,2,128], index: 3, kind: input, shape index: {}]   ;;  %s612_s4 = inlined_call_operand.vmem [shape: bf16[2,2,128], index: 4, kind: input, shape index: {}]   ;;  %s613_s5 = inlined_call_operand.vmem [shape: f32[2,1], index: 5, kind: output, shape index: {}]  }
   0x1   :  { %11 = vsyncpa [#allocation5], 0  ;;  %s503_s18 = smov [#allocation2]   ;;  %s455_s22 = scalar_lea.hbm %s608_s0, 1024 }
   0x2   :  { %s17_s19 = sshll.u32 %s503_s18, 4  ;;  %p456_p0 = scmp.ne.s32.totalorder %s608_s0, %s455_s22  ;;  %s18_s19 = int_to_ptr.vmem [resolvable:$true] %s17_s19 }
   0x3   :  { %p459_p1 = scmp.lt.u32.totalorder %s455_s22, %s608_s0 }
   0x5   :  { %p461_p2 = pnand %p459_p1, %p456_p0 }
   0x7   :  { %464 = shalt.err (!%p461_p2)
}
   0x8   :  { %s465_s27 = scalar_lea.vmem %s18_s19, 1024  ;;  %p470_p4 = scmp.lt.s32.totalorder %s18_s19, %s18_s19 }
   0x9   :  { %p466_p3 = scmp.ne.s32.totalorder %s18_s19, %s465_s27  ;;  %p471_p5 = scmp.lt.s32.totalorder %s465_s27, %s465_s27 }
   0xb   :  { %p472_p6 = por %p471_p5, %p470_p4 }
   0xd   :  { %p473_p7 = pnand %p472_p6, %p466_p3 }
   0xf   :  { %476 = shalt.err (!%p473_p7)
}
  0x10   :  { %s504_s28 = smov 64   ;;  %s505_s29 = smov 4  }
  0x11   :  { %23 = dma.hbm_to_vmem [thread:$0]  %s608_s0, 1024, %s18_s19, [#allocation3], %s504_s28, %s504_s28, %s505_s29  }
  0x12   :  { %s506_s7 = smov [#allocation4]   ;;  %s477_s11 = scalar_lea.hbm %s610_s2, 32 }
  0x13   :  { %s32_s8 = sshll.u32 %s506_s7, 4  ;;  %p478_p8 = scmp.ne.s32.totalorder %s610_s2, %s477_s11  ;;  %s33_s8 = int_to_ptr.vmem [resolvable:$true] %s32_s8 }
  0x14   :  { %p481_p9 = scmp.lt.u32.totalorder %s477_s11, %s610_s2 }
  0x16   :  { %p483_p10 = pnand %p481_p9, %p478_p8 }
  0x18   :  { %486 = shalt.err (!%p483_p10)
}
  0x19   :  { %s487_s16 = scalar_lea.vmem %s33_s8, 32  ;;  %p492_p12 = scmp.lt.s32.totalorder %s33_s8, %s33_s8 }
  0x1a   :  { %p488_p11 = scmp.ne.s32.totalorder %s33_s8, %s487_s16  ;;  %p493_p13 = scmp.lt.s32.totalorder %s487_s16, %s487_s16 }
  0x1c   :  { %p494_p0 = por %p493_p13, %p492_p12 }
  0x1e   :  { %p495_p1 = pnand %p494_p0, %p488_p11 }
  0x20   :  { %498 = shalt.err (!%p495_p1)
}
  0x21   :  { %35 = dma.hbm_to_vmem [thread:$0]  %s610_s2, 32, %s33_s8, [#allocation5]  }
  0x22   :  { %499 = dma.done.wait [#allocation3], 1024  }
  0x23   :  { %500 = vsyncadd [#allocation3], 4294966272 }
  0x24   :  { %501 = dma.done.wait [#allocation5], 32  }
  0x25   :  { %502 = vsyncadd [#allocation5], 4294967264  ;;  %vm187_vm0 = vcmask 1041408   ;;  %v49_v0 = vld [vmem:[%s612_s4] sm:$0x1]  ;;  %v507_v7 = vmov 0.0   ;;  %v76_v15 = vlaneseq }
  0x26   :  { %v50_v1 = vld [vmem:[%s612_s4 + $0x1] sm:$0x1]  ;;  %v571_v2 = vunpack.c.l.bf16 %v49_v0  ;;  %426 = vmatprep.subr.mxu1 %v507_v7  ;;  %vm508_vm1 = vmmov 0   ;;  %406 = vmatprep.subr.bf16.mxu0 %v507_v7  ;;  %v440_v9 = vld [vmem:[#allocation2 + $0x8] sm:$0xff]   ;;  %v441_v10 = vld [vmem:[#allocation2 + $0x10] sm:$0xff]   ;;  %vm207_vm2 = vcmask 1041409  }
  0x27   :  { %v573_v3 = vunpack.c.l.bf16 %v50_v1  ;;  %v194_v6 = vld [vmem:[%s609_s1] sm:$0x3]  ;;  %428 = vmatprep.mubr.msk.f32.mxu1 %vm508_vm1, %v507_v7  ;;  %422 = vmatprep.mubr.msk.bf16.mxu0 %vm508_vm1, %v507_v7  ;;  %v442_v11 = vld [vmem:[#allocation2 + $0x18] sm:$0xff]   ;;  %v509_v12 = vmov 1966171168   ;;  %v444_v17 = vld [vmem:[#allocation2 + $0x28] sm:$0xff]   ;;  %v72_v19 = vcombine.low %v49_v0, %v50_v1 }
  0x28   :  { %v188_v4 = vsel %vm187_vm0, %v571_v2, 0.0  ;;  %427 = vmatpush3.msk.msra.mxu1 %vm187_vm0, %v194_v6  ;;  %v439_v8 = vld [vmem:[#allocation2] sm:$0xff]   ;;  %v74_v13 = vunpack.c.l.s4 %v509_v12  ;;  %v77_v18 = vshrl.u32 %v76_v15, 7  ;;  %v445_v21 = vld [vmem:[#allocation2 + $0x30] sm:$0xff]   ;;  %v446_v23 = vld [vmem:[#allocation2 + $0x38] sm:$0xff]   ;;  %v198_v25 = vand.u32 127, %v76_v15 }
  0x29   :  { %v191_v5 = vsel %vm187_vm0, %v573_v3, 0.0  ;;  %189 = vadd.xlane.f32.xlu0 %v188_v4  ;;  %407 = vmatpush3.bf16.msra.mxu0 %v439_v8  ;;  %v443_v14 = vld [vmem:[#allocation2 + $0x20] sm:$0xff]   ;;  %vm209_vm3 = vcmask 15360   ;;  %vm302_vm4 = vcmask 9216   ;;  %v510_v43 = vmov 1983009808  }
  0x2a   :  { %408 = vmatprep.subr.bf16.mxu0 %v507_v7  ;;  %v75_v16 = vunpack.c.0.s8 %v74_v13  ;;  %v583_v27 = vsub.s32 %v198_v25, %v77_v18  ;;  %v287_v37 = vsub.s32 0, %v77_v18  ;;  %v294_v38 = vsub.s32 1, %v77_v18  ;;  %v53_v52 = vld [vmem:[#allocation4] sm:$0x3] }
  0x2b   :  { %v178_v44 = vunpack.c.l.s4 %v510_v43  ;;  %vm343_vm5 = vcmp.eq.f32.partialorder %v53_v52, 1.0  ;;  %vm375_vm6 = vcmask 1024  }
  0x2c   :  { %v78_v20 = vsub.s32 %v75_v16, %v77_v18  ;;  %v48_v16 = vld [vmem:[%s611_s3 + $0x2] sm:$0x3] }
  0x2d   :  { %192 = vadd.xlane.f32.xlu0 %v191_v5  ;;  %409 = vmatpush3.bf16.msra.mxu0 %v440_v9  ;;  %v179_v45 = vunpack.c.0.s8 %v178_v44 }
  0x2e   :  { %410 = vmatprep.subr.bf16.mxu0 %v507_v7  ;;  %v79_v22 = vrot.slane %v72_v19, %v78_v20 }
  0x2f   :  { %v182_v46 = vsub.s32 %v179_v45, %v77_v18  ;;  %v47_v18 = vld [vmem:[%s611_s3] sm:$0x3] }
  0x30   :  { %v86_v24 = vrot.slane %v79_v22, %v78_v20 }
  0x31   :  { %411 = vmatpush3.bf16.msra.mxu0 %v441_v10 }
  0x32   :  { %412 = vmatprep.subr.bf16.mxu0 %v507_v7 }
  0x35   :  { %413 = vmatpush3.bf16.msra.mxu0 %v442_v11 }
  0x36   :  { %414 = vmatprep.subr.bf16.mxu0 %v507_v7 }
  0x39   :  { %415 = vmatpush3.bf16.msra.mxu0 %v443_v14 }
  0x3a   :  { %416 = vmatprep.subr.bf16.mxu0 %v507_v7 }
  0x3d   :  { %417 = vmatpush3.bf16.msra.mxu0 %v444_v17 }
  0x3e   :  { %418 = vmatprep.subr.bf16.mxu0 %v507_v7 }
  0x41   :  { %419 = vmatpush3.bf16.msra.mxu0 %v445_v21 }
  0x42   :  { %420 = vmatprep.subr.bf16.mxu0 %v507_v7 }
  0x45   :  { %421 = vmatpush3.bf16.msra.mxu0 %v446_v23 }
  0x48   :  { %423 = vmatmul.mubr.bf16.vlgmr.msra.gmra.mrb[0].mxu0 %v86_v24  ;;  %v350_v24 = vmax.f32 %v47_v18, 0.0 }
  0xb6   :  { %v190_v26 = vpop.xlane.xlu0 %189 }
  0xb7   :  { %v202_v29 = vrot.slane %v190_v26, %v583_v27 }
  0xba   :  { %v193_v28 = vpop.xlane.xlu0 %192 }
  0xbb   :  { %v206_v30 = vrot.slane %v193_v28, %v583_v27 }
  0xbd   :  { %v208_v31 = vsel %vm207_vm2, %v206_v30, %v202_v29 }
  0xbe   :  { %429 = vmatmul.mubr.msk.f32.vlgmr.msra.gmra.mrb[0].mxu1 %vm209_vm3, %v208_v31  ;;  %v303_v32 = vsel %vm302_vm4, %v208_v31, 0.0 }
  0xbf   :  { %304 = vadd.xlane.f32.xlu1 %v303_v32 }
 0x11b   :  { %v170_v33 = vpop.f32.mrb[0].mxu0 }
 0x11c   :  { %v424_v34 = vpop.f32.mrb[1].mxu0  ;;  %v183_v47 = vrot.slane %v170_v33, %v182_v46 }
 0x11d   :  { %v173_v35 = vpop.f32.mrb[2].mxu0 }
 0x11e   :  { %v425_v36 = vpop.f32.mrb[3].mxu0  ;;  %v184_v51 = vcombine.high %v183_v47, %v183_v47 }
 0x14c   :  { %v305_v48 = vpop.xlane.xlu1 %304 }
 0x14d   :  { %v310_v49 = vrot.slane %v305_v48, %v287_v37  ;;  %v314_v50 = vrot.slane %v305_v48, %v294_v38 }
 0x14f   :  { %v319_v55 = vadd.f32 %v310_v49, %v53_v52  ;;  %v320_v56 = vadd.f32 %v314_v50, %v53_v52 }
 0x191   :  { %v281_v39 = vpop.f32.mrb[0].mxu1 }
 0x192   :  { %v430_v40 = vpop.f32.mrb[1].mxu1  ;;  %v295_v41 = vrot.slane %v281_v39, %v294_v38  ;;  %v288_v42 = vrot.slane %v281_v39, %v287_v37 }
 0x194   :  { %297 = vbcast.lane.b32.xlu0 %v295_v41, 256  ;;  %290 = vbcast.lane.b32.xlu1 %v288_v42, 256 }
 0x206   :  { %v298_v53 = vpop.permute.xlu0 %297  ;;  %v291_v54 = vpop.permute.xlu1 %290 }
 0x207   :  { %v300_v57 = vadd.f32 %v298_v53, %v184_v51  ;;  %v299_v58 = vadd.f32 %v291_v54, %v183_v47 }
 0x209   :  { %v322_v59 = vsub.f32 %v320_v56, %v300_v57  ;;  %v321_v60 = vsub.f32 %v319_v55, %v299_v58  ;;  %v318_v5 = vsub.f32 %v314_v50, %v300_v57  ;;  %v317_v7 = vsub.f32 %v310_v49, %v299_v58 }
 0x20b   :  { %v394_v61 = vadd.f32 -1.0, %v322_v59  ;;  %v393_v62 = vadd.f32 -1.0, %v321_v60  ;;  %447 = vrcp.f32 %v322_v59  ;;  %v330_v10 = vadd.f32 %v318_v5, %v573_v3 }
 0x20c   :  { %449 = vrcp.f32 %v321_v60  ;;  %v329_v13 = vadd.f32 %v317_v7, %v571_v2 }
 0x20d   :  { %v334_v63 = vadd.f32 %v394_v61, %v573_v3  ;;  %v333_v0 = vadd.f32 %v393_v62, %v571_v2  ;;  %v351_v3 = vmax.f32 %v48_v16, 0.0 }
 0x20f   :  { %v336_v1 = vmax.f32 %v334_v63, 1.0  ;;  %v335_v4 = vmax.f32 %v333_v0, 1.0 }
 0x211   :  { %451 = vrcp.f32 %v336_v1 }
 0x212   :  { %453 = vrcp.f32 %v335_v4 }
 0x215   :  { %v448_v6 = vpop.eup %447 }
 0x216   :  { %v450_v8 = vpop.eup %449  ;;  %v326_v9 = vmul.f32 %v448_v6, %v318_v5 }
 0x217   :  { %v324_v12 = vmul.f32 %v450_v8, %v317_v7 }
 0x218   :  { %v328_v19 = vsub.f32 1.0, %v326_v9 }
 0x219   :  { %v327_v21 = vsub.f32 1.0, %v324_v12 }
 0x21b   :  { %v452_v11 = vpop.eup %451 }
 0x21c   :  { %v454_v14 = vpop.eup %453  ;;  %v340_v15 = vmul.f32 %v452_v11, %v330_v10 }
 0x21d   :  { %v338_v17 = vmul.f32 %v454_v14, %v329_v13 }
 0x21e   :  { %v342_v20 = vsub.f32 1.0, %v340_v15 }
 0x21f   :  { %v341_v22 = vsub.f32 1.0, %v338_v17 }
 0x220   :  { %v345_v23 = vsub.f32 %v328_v19, %v342_v20 }
 0x221   :  { %v344_v2 = vsub.f32 %v327_v21, %v341_v22 }
 0x222   :  { %v349_v25 = vsel %vm343_vm5, %v328_v19, %v345_v23 }
 0x223   :  { %v353_v26 = vmul.f32 %v351_v3, %v349_v25  ;;  %v348_v28 = vsel %vm343_vm5, %v327_v21, %v344_v2 }
 0x224   :  { %v352_v29 = vmul.f32 %v350_v24, %v348_v28 }
 0x225   :  { %v357_v30 = vsel %vm187_vm0, %v353_v26, 0.0 }
 0x226   :  { %358 = vadd.xlane.f32.xlu0 %v357_v30  ;;  %v354_v31 = vsel %vm187_vm0, %v352_v29, 0.0 }
 0x227   :  { %355 = vadd.xlane.f32.xlu1 %v354_v31 }
 0x2b3   :  { %v359_v32 = vpop.xlane.xlu0 %358 }
 0x2b4   :  { %v369_v33 = vrot.slane %v359_v32, %v583_v27  ;;  %v356_v34 = vpop.xlane.xlu1 %355 }
 0x2b5   :  { %v365_v35 = vrot.slane %v356_v34, %v583_v27 }
 0x2b7   :  { %v370_v36 = vsel %vm207_vm2, %v369_v33, %v365_v35 }
 0x2b8   :  { %v372_v37 = vsel %vm302_vm4, %v370_v36, 0.0 }
 0x2b9   :  { %373 = vadd.xlane.f32.xlu1 %v372_v37 }
 0x346   :  { %v374_v38 = vpop.xlane.xlu1 %373 }
 0x347   :  { %376 = vst.msk [vmem:[%s613_s5] sm:$0x3] %vm375_vm6, %v374_v38 }
 0x348   :  { %381 = vsyncpa [#allocation3], 1 }
 0x349   :  { %382 = vsyncpa [#allocation5], 1 }

</bundles_post_ra>
